<compile_context>
chip_gen: v7x
topology: tpu7x:2x2x1
jax: 0.10.0
libtpu: 0.0.40
codegen_flags: <defaults>
</compile_context>

<pallas_src>
import functools
import math

import jax
import jax.numpy as jnp
from jax import lax
from jax.experimental import pallas as pl
from jax.experimental.pallas import tpu as pltpu


def _round_up(x, m):
    return (x + m - 1) // m * m


def _pick_row_tile(m, pack):
    # MXU-friendly row tile: 256-multiples when large (v6e/v7x 2x256x256 MXU),
    # otherwise the smallest sublane-packed size that covers m.
    if m >= 512:
        return 512
    if m >= 256:
        return 256
    if m >= 128:
        return 128
    return _round_up(max(m, 1), pack)


def _pick_lane_tile(n, cap=512):
    # Lane axis: multiples of 128; cap keeps the double-buffered footprint
    # safely under ~48 MiB per TensorCore (v7x has 64 MiB VMEM / TC).
    if n >= cap:
        return cap
    return _round_up(max(n, 1), 128)


def _make_kernel(has_excit, has_bias, use_scratch):
    """Builds the tiled kernel:  o = (x @ w^T) [* excit] [+ bias]."""

    def _matmul(x_ref, w_ref):
        # NT matmul: contract dim 1 of both operands. Weight stays in its
        # native (out_features, in_features) layout -> no wrapper transpose,
        # and the MXU takes this form natively.
        return lax.dot_general(
            x_ref[...], w_ref[...],
            dimension_numbers=(((1,), (1,)), ((), ())),
            preferred_element_type=jnp.float32)

    def _epilogue(acc, sb_ref, o_ref):
        out = acc
        if has_excit:
            out = out * sb_ref[0:1, :]      # excitability row
        if has_bias:
            out = out + sb_ref[1:2, :]      # bias row
        o_ref[...] = out.astype(o_ref.dtype)

    if use_scratch:
        # Non-f32 output: keep an f32 accumulator in VMEM scratch.
        def kernel(x_ref, w_ref, sb_ref, o_ref, acc_ref):
            k = pl.program_id(2)

            @pl.when(k == 0)
            def _():
                acc_ref[...] = jnp.zeros_like(acc_ref)

            acc_ref[...] += _matmul(x_ref, w_ref)

            @pl.when(k == pl.num_programs(2) - 1)
            def _():
                _epilogue(acc_ref[...], sb_ref, o_ref)
    else:
        # f32 output: its index_map ignores k, so the block is resident across
        # the contraction axis -> accumulate directly into o_ref (no scratch,
        # no extra VMEM->VMEM copy / store pass).
        def kernel(x_ref, w_ref, sb_ref, o_ref):
            k = pl.program_id(2)

            @pl.when(k == 0)
            def _():
                o_ref[...] = jnp.zeros_like(o_ref)

            o_ref[...] += _matmul(x_ref, w_ref)

            @pl.when(k == pl.num_programs(2) - 1)
            def _():
                _epilogue(o_ref[...], sb_ref, o_ref)

    return kernel


@functools.partial(jax.jit, static_argnames=("use_bf16_operands",))
def linear_excitability_forward(x, weight, excitability=None, bias=None,
                                *, use_bf16_operands=True):
    """Pallas forward of LinearExcitability.

    x            : (N, *, in_features)
    weight       : (out_features, in_features)
    excitability : (out_features,) or None
    bias         : (out_features,) or None
    returns      : (N, *, out_features), dtype follows x.dtype
    """
    *lead, in_features = x.shape
    out_features, in_features_w = weight.shape
    assert in_features == in_features_w, "weight / input feature mismatch"

    M = int(math.prod(lead)) if lead else 1
    K = in_features
    N = out_features

    out_dtype = x.dtype
    op_dtype = jnp.bfloat16 if use_bf16_operands else jnp.float32
    op_bytes = 2 if use_bf16_operands else 4
    out_bytes = jnp.dtype(out_dtype).itemsize

    has_excit = excitability is not None
    has_bias = bias is not None
    use_scratch = out_dtype != jnp.float32

    x2 = x.reshape(M, K).astype(op_dtype)
    w = weight.astype(op_dtype)              # native (out, in) layout, no transpose

    # Excitability + bias merged into one (2, N) f32 stream (row 0 = scale,
    # row 1 = shift); unused rows are never read by the specialised kernel.
    scale = (excitability.astype(jnp.float32) if has_excit
             else jnp.ones((N,), jnp.float32))
    shift = (bias.astype(jnp.float32) if has_bias
             else jnp.zeros((N,), jnp.float32))
    sb = jnp.stack([scale, shift], axis=0)    # (2, N)

    # --- tile sizing ---------------------------------------------------------
    row_pack = 16 if use_bf16_operands else 8         # bf16 packs 16 rows / vreg
    tm = _pick_row_tile(M, row_pack)                   # rows (sublane axis)
    tn = _pick_lane_tile(N, 512)                       # out features (lane axis)
    tk = min(2048, _round_up(K, 128))                  # contraction (full K if small)

    Mp = _round_up(M, tm)
    Kp = _round_up(K, tk)
    Np = _round_up(N, tn)

    # Fast path: skip pads that would be no-ops (they still cost an HBM pass).
    if Mp != M or Kp != K:
        x2 = jnp.pad(x2, ((0, Mp - M), (0, Kp - K)))
    if Np != N or Kp != K:
        w = jnp.pad(w, ((0, Np - N), (0, Kp - K)))
    if Np != N:
        sb = jnp.pad(sb, ((0, 0), (0, Np - N)))

    grid = (Mp // tm, Np // tn, Kp // tk)

    # --- VMEM budget: actual double-buffered footprint + slack ---------------
    footprint = 2 * (tm * tk * op_bytes      # x block (double-buffered)
                     + tn * tk * op_bytes    # weight block
                     + tm * tn * out_bytes   # output block
                     + 2 * tn * 4)           # scale/bias block
    if use_scratch:
        footprint += tm * tn * 4
    try:
        vmem_cap = int(pltpu.get_tpu_info().vmem_capacity_bytes)
    except Exception:
        vmem_cap = 64 << 20                  # conservative (v7x per-TC)
    vmem_bytes = int(min(max(footprint + (4 << 20), 16 << 20),
                         max(vmem_cap - (16 << 20), 32 << 20)))

    # --- realistic cost estimate (accounts for grid re-reads) -----------------
    gi, gj, _ = grid
    cost = pl.CostEstimate(
        flops=2 * Mp * Kp * Np,
        transcendentals=0,
        bytes_accessed=(Mp * Kp * op_bytes * gj      # x re-read per out-tile col
                        + Np * Kp * op_bytes * gi    # w re-read per row tile
                        + Mp * Np * out_bytes        # output written once
                        + 2 * Np * 4 * gi))          # scale/bias

    kernel = _make_kernel(has_excit, has_bias, use_scratch)
    scratch_shapes = [pltpu.VMEM((tm, tn), jnp.float32)] if use_scratch else []

    # TODO(synk): if an xprof trace shows exposed DMA at K-step boundaries on
    # v7x, sweep pipeline_mode=pl.Buffered(3) on the weight BlockSpec.
    out_padded = pl.pallas_call(
        kernel,
        out_shape=jax.ShapeDtypeStruct((Mp, Np), out_dtype),
        grid_spec=pltpu.PrefetchScalarGridSpec(
            num_scalar_prefetch=0,
            grid=grid,
            in_specs=[
                pl.BlockSpec((tm, tk), lambda i, j, k: (i, k)),   # x rows
                pl.BlockSpec((tn, tk), lambda i, j, k: (j, k)),   # weight (native)
                pl.BlockSpec((2, tn), lambda i, j, k: (0, j)),    # [excit; bias]
            ],
            out_specs=pl.BlockSpec((tm, tn), lambda i, j, k: (i, j)),
            scratch_shapes=scratch_shapes,
        ),
        compiler_params=pltpu.CompilerParams(
            dimension_semantics=("parallel", "parallel", "arbitrary"),
            vmem_limit_bytes=vmem_bytes),
        cost_estimate=cost,
    )(x2, w, sb)

    out = out_padded if (Mp == M and Np == N) else out_padded[:M, :N]
    return out.reshape(*lead, N) if lead else out.reshape(N)


def _reference(x, weight, excitability=None, bias=None):
    """Pure-JAX reference of linearExcitability (same forward semantics)."""
    out = jnp.matmul(x, jnp.transpose(weight))
    if excitability is not None:
        out = out * excitability
    if bias is not None:
        out = out + bias
    return out


if __name__ == "__main__":
    # (N, *, in_features) with * = seq, per the module's shape contract.
    N, S, in_features, out_features = 2, 8, 32, 64

    key = jax.random.PRNGKey(0)
    kx, kw, kb, ke = jax.random.split(key, 4)

    x = jax.random.normal(kx, (N, S, in_features), dtype=jnp.float32)

    # PyTorch-like init: uniform(-stdv, stdv) with stdv = 1/sqrt(in_features).
    stdv = 1.0 / math.sqrt(in_features)
    weight = jax.random.uniform(kw, (out_features, in_features),
                                minval=-stdv, maxval=stdv, dtype=jnp.float32)
    bias = jax.random.uniform(kb, (out_features,),
                              minval=-stdv, maxval=stdv, dtype=jnp.float32)
    # Non-trivial excitability values so the multiplicative path is exercised.
    excit = jax.random.uniform(ke, (out_features,),
                               minval=0.5, maxval=1.5, dtype=jnp.float32)

    # 1) Default module config: excitability = None (bias only). bf16 operands
    #    (f32 accumulation) -> tolerance covers bf16 operand rounding; real
    #    semantics bugs (missing bias / excitability) are >= 1e-1 effects.
    out_default = jax.block_until_ready(
        linear_excitability_forward(x, weight, None, bias))
    ref_default = _reference(x, weight, None, bias)
    assert out_default.shape == (N, S, out_features)
    assert out_default.dtype == x.dtype
    assert jnp.allclose(out_default, ref_default, rtol=5e-2, atol=5e-2), \
        "mismatch vs reference (bias-only path, bf16 operands)"

    # 2) Excitability path.
    out_ex = jax.block_until_ready(
        linear_excitability_forward(x, weight, excit, bias))
    ref_ex = _reference(x, weight, excit, bias)
    assert out_ex.shape == (N, S, out_features)
    assert jnp.allclose(out_ex, ref_ex, rtol=5e-2, atol=5e-2), \
        "mismatch vs reference (excitability path, bf16 operands)"

    # 3) Exact-f32-semantics opt-out path, tighter tolerance.
    out_f32 = jax.block_until_ready(
        linear_excitability_forward(x, weight, excit, bias,
                                    use_bf16_operands=False))
    assert jnp.allclose(out_f32, ref_ex, rtol=1e-2, atol=1e-2), \
        "mismatch vs reference (f32-operand path)"

    # 4) bf16 activations: output dtype follows x.dtype (exercises the
    #    f32-scratch accumulator variant).
    x_bf16 = x.astype(jnp.bfloat16)
    out_bf16 = jax.block_until_ready(
        linear_excitability_forward(x_bf16, weight, excit, bias))
    assert out_bf16.dtype == jnp.bfloat16
    assert jnp.allclose(out_bf16.astype(jnp.float32),
                        _reference(x_bf16, weight, excit, bias),
                        rtol=1e-1, atol=1e-1), \
        "mismatch vs reference (bf16 activation / scratch-accumulator path)"

    print("KERNEL_OK")
</pallas_src>

<mosaic_0001>
module attributes {stable_mosaic.version = 11 : i64} {
  func.func @kernel(%arg0: i32, %arg1: i32, %arg2: i32, %arg3: memref<16x128xbf16, #tpu.memory_space<vmem>>, %arg4: memref<128x128xbf16, #tpu.memory_space<vmem>>, %arg5: memref<2x128xf32, #tpu.memory_space<vmem>>, %arg6: memref<16x128xf32, #tpu.memory_space<vmem>>) attributes {dimension_semantics = [#tpu.dimension_semantics<parallel>, #tpu.dimension_semantics<parallel>, #tpu.dimension_semantics<arbitrary>], iteration_bounds = array<i64: 1, 1, 1>, scalar_prefetch = 0 : i64, scratch_operands = 0 : i64, tpu.core_type = #tpu.core_type<tc>, window_params = [{transform_indices = @transform_0, window_bounds = array<i64: 16, 128>}, {transform_indices = @transform_1, window_bounds = array<i64: 128, 128>}, {transform_indices = @transform_2, window_bounds = array<i64: 2, 128>}, {transform_indices = @transform_3, window_bounds = array<i64: 16, 128>}]} {
    %c0_i32 = arith.constant 0 : i32
    %0 = arith.cmpi eq, %arg2, %c0_i32 : i32
    %1 = arith.extui %0 : i1 to i32
    %c0_i32_0 = arith.constant 0 : i32
    %2 = arith.cmpi ne, %1, %c0_i32_0 : i32
    scf.if %2 {
      %cst_10 = arith.constant 0.000000e+00 : f32
      %12 = vector.broadcast %cst_10 : f32 to vector<16x128xf32>
      %c0_11 = arith.constant 0 : index
      %c0_12 = arith.constant 0 : index
      %13 = vector.load %arg6[%c0_11, %c0_12] : memref<16x128xf32, #tpu.memory_space<vmem>>, vector<16x128xf32>
      tpu.vector_store %arg6[%c0_11, %c0_12], %12 {strides = array<i32>} : memref<16x128xf32, #tpu.memory_space<vmem>>, vector<16x128xf32>,
    } else {
    }
    %c0 = arith.constant 0 : index
    %c0_1 = arith.constant 0 : index
    %3 = vector.load %arg6[%c0, %c0_1] : memref<16x128xf32, #tpu.memory_space<vmem>>, vector<16x128xf32>
    %c0_2 = arith.constant 0 : index
    %c0_3 = arith.constant 0 : index
    %4 = vector.load %arg3[%c0_2, %c0_3] : memref<16x128xbf16, #tpu.memory_space<vmem>>, vector<16x128xbf16>
    %c0_4 = arith.constant 0 : index
    %c0_5 = arith.constant 0 : index
    %5 = vector.load %arg4[%c0_4, %c0_5] : memref<128x128xbf16, #tpu.memory_space<vmem>>, vector<128x128xbf16>
    %cst = arith.constant dense<0.000000e+00> : vector<16x128xf32>
    %6 = tpu.matmul %4, %5, %cst {dimension_numbers = #tpu.dot_dimension_numbers<[1], [1], [0], [0], [0, 0, 1, 0], [], []>} : vector<16x128xbf16>, vector<128x128xbf16>, vector<16x128xf32> -> vector<16x128xf32>
    %7 = arith.addf %3, %6 : vector<16x128xf32>
    %c0_6 = arith.constant 0 : index
    %c0_7 = arith.constant 0 : index
    %8 = vector.load %arg6[%c0_6, %c0_7] : memref<16x128xf32, #tpu.memory_space<vmem>>, vector<16x128xf32>
    tpu.vector_store %arg6[%c0_6, %c0_7], %7 {strides = array<i32>} : memref<16x128xf32, #tpu.memory_space<vmem>>, vector<16x128xf32>,
    %c0_i32_8 = arith.constant 0 : i32
    %9 = arith.cmpi eq, %arg2, %c0_i32_8 : i32
    %10 = arith.extui %9 : i1 to i32
    %c0_i32_9 = arith.constant 0 : i32
    %11 = arith.cmpi ne, %10, %c0_i32_9 : i32
    scf.if %11 {
      %c0_10 = arith.constant 0 : index
      %c0_11 = arith.constant 0 : index
      %12 = vector.load %arg6[%c0_10, %c0_11] : memref<16x128xf32, #tpu.memory_space<vmem>>, vector<16x128xf32>
      %c1 = arith.constant 1 : index
      %c0_12 = arith.constant 0 : index
      %13 = vector.load %arg5[%c1, %c0_12] : memref<2x128xf32, #tpu.memory_space<vmem>>, vector<1x128xf32>
      %14 = vector.broadcast %13 : vector<1x128xf32> to vector<16x128xf32>
      %15 = arith.addf %12, %14 : vector<16x128xf32>
      %c0_13 = arith.constant 0 : index
      %c0_14 = arith.constant 0 : index
      %16 = vector.load %arg6[%c0_13, %c0_14] : memref<16x128xf32, #tpu.memory_space<vmem>>, vector<16x128xf32>
      tpu.vector_store %arg6[%c0_13, %c0_14], %15 {strides = array<i32>} : memref<16x128xf32, #tpu.memory_space<vmem>>, vector<16x128xf32>,
    } else {
    }
    return
  }
  func.func @transform_0(%arg0: i32, %arg1: i32, %arg2: i32) -> (i32, i32) {
    %c0_i32 = arith.constant 0 : i32
    return %arg0, %arg2 : i32, i32
  }
  func.func @transform_1(%arg0: i32, %arg1: i32, %arg2: i32) -> (i32, i32) {
    %c0_i32 = arith.constant 0 : i32
    return %arg1, %arg2 : i32, i32
  }
  func.func @transform_2(%arg0: i32, %arg1: i32, %arg2: i32) -> (i32, i32) {
    %c0_i32 = arith.constant 0 : i32
    %c0_i32_0 = arith.constant 0 : i32
    return %c0_i32, %arg1 : i32, i32
  }
  func.func @transform_3(%arg0: i32, %arg1: i32, %arg2: i32) -> (i32, i32) {
    %c0_i32 = arith.constant 0 : i32
    return %arg0, %arg1 : i32, i32
  }
}

</mosaic_0001>

<bundles_post_ra>
// kernel: linear_excitability_forward.1
= control target key start
LH: loop header
LB: loop body
LE: loop exit
PB: predicated region body
PF: predicated region fallthrough
CT: control target
= control target key end

     0   :  { %v208_v0 = vmov 0.0   ;;  %vm209_vm0 = vmmov 0   ;;  %s266_s1 = inlined_call_operand.vmem [shape: bf16[128,128], index: 1, kind: input, shape index: {}]   ;;  %s267_s0 = inlined_call_operand.vmem [shape: bf16[16,128], index: 0, kind: input, shape index: {}]   ;;  %s268_s2 = inlined_call_operand.vmem [shape: f32[2,128], index: 2, kind: input, shape index: {}]   ;;  %s269_s3 = inlined_call_operand.vmem [shape: f32[16,128], index: 3, kind: output, shape index: {}]  }
   0x1   :  { %177 = vmatprep.subr.bf16.mxu0 %v208_v0  ;;  %v199_v1 = vld [vmem:[%s266_s1] sm:$0xff]   ;;  %193 = vmatprep.mubr.msk.bf16.mxu0 %vm209_vm0, %v208_v0  ;;  %v200_v2 = vld [vmem:[%s266_s1 + $0x8] sm:$0xff]   ;;  %v201_v3 = vld [vmem:[%s266_s1 + $0x10] sm:$0xff]  }
   0x2   :  { %178 = vmatpush3.bf16.xpose.msra.mxu0 %v199_v1  ;;  %v202_v4 = vld [vmem:[%s266_s1 + $0x18] sm:$0xff]   ;;  %v203_v5 = vld [vmem:[%s266_s1 + $0x20] sm:$0xff]   ;;  %v204_v6 = vld [vmem:[%s266_s1 + $0x28] sm:$0xff]  }
   0x3   :  { %179 = vmatprep.subr.bf16.mxu0 %v208_v0  ;;  %v205_v7 = vld [vmem:[%s266_s1 + $0x30] sm:$0xff]   ;;  %v206_v8 = vld [vmem:[%s266_s1 + $0x38] sm:$0xff]   ;;  %v207_v9 = vld [vmem:[%s267_s0] sm:$0xff]  }
   0x4   :  { %v167_v11 = vld [vmem:[%s268_s2 + $0x1] ss:$0 sm:$0xff] }
   0xa   :  { %180 = vmatpush3.bf16.xpose.msra.mxu0 %v200_v2 }
   0xb   :  { %181 = vmatprep.subr.bf16.mxu0 %v208_v0 }
  0x12   :  { %182 = vmatpush3.bf16.xpose.msra.mxu0 %v201_v3 }
  0x13   :  { %183 = vmatprep.subr.bf16.mxu0 %v208_v0 }
  0x1a   :  { %184 = vmatpush3.bf16.xpose.msra.mxu0 %v202_v4 }
  0x1b   :  { %185 = vmatprep.subr.bf16.mxu0 %v208_v0 }
  0x22   :  { %186 = vmatpush3.bf16.xpose.msra.mxu0 %v203_v5 }
  0x23   :  { %187 = vmatprep.subr.bf16.mxu0 %v208_v0 }
  0x2a   :  { %188 = vmatpush3.bf16.xpose.msra.mxu0 %v204_v6 }
  0x2b   :  { %189 = vmatprep.subr.bf16.mxu0 %v208_v0 }
  0x32   :  { %190 = vmatpush3.bf16.xpose.msra.mxu0 %v205_v7 }
  0x33   :  { %191 = vmatprep.subr.bf16.mxu0 %v208_v0 }
  0x3a   :  { %192 = vmatpush3.bf16.xpose.msra.mxu0 %v206_v8 }
  0x41   :  { %194 = vmatmul.mubr.bf16.vlgmr.msra.gmra.mrb[0].mxu0 %v207_v9 }
 0x114   :  { %v129_v10 = vpop.f32.mrb[0].mxu0 }
 0x115   :  { %v195_v12 = vpop.f32.mrb[1].mxu0  ;;  %v150_v14 = vadd.f32 %v167_v11, %v129_v10 }
 0x116   :  { %v132_v13 = vpop.f32.mrb[2].mxu0 }
 0x117   :  { %v196_v15 = vpop.f32.mrb[3].mxu0  ;;  %152 = vst [vmem:[%s269_s3] sm:$0xff] %v150_v14  ;;  %v151_v16 = vadd.f32 %v167_v11, %v132_v13 }
 0x119   :  { %153 = vst [vmem:[%s269_s3 + $0x8] sm:$0xff] %v151_v16 }

</bundles_post_ra>
